<compile_context>
chip_gen: v7x
topology: tpu7x:2x2x1
jax: 0.10.0
libtpu: 0.0.40
codegen_flags: <defaults>
</compile_context>

<pallas_src>
import functools

import jax
import jax.numpy as jnp
from jax.experimental import pallas as pl
from jax.experimental.pallas import tpu as pltpu


def _round_up(x: int, m: int) -> int:
    return (x + m - 1) // m * m


def _ln_relu(h, gamma, beta, *, eps, flag_normalization, inv_n):
    """One-pass LayerNorm (biased var, PyTorch semantics) + ReLU, all f32."""
    if flag_normalization:
        s1 = jnp.sum(h, axis=-1, keepdims=True)
        s2 = jnp.sum(h * h, axis=-1, keepdims=True)
        mean = s1 * inv_n
        var = jnp.maximum(s2 * inv_n - mean * mean, 0.0)
        h = (h - mean) * jax.lax.rsqrt(var + eps)
        h = h * gamma + beta
    return jnp.maximum(h, 0.0)


def _mlp_skip_linear_kernel(x_ref, w1_ref, b1_ref, g_ref, beta_ref,
                            w2_ref, b2_ref, o_ref, *,
                            eps: float, flag_normalization: bool, inv_n: float):
    """dim_input != dim_output: skip branch is a second Linear."""
    x = x_ref[...]                       # native dtype straight into the MXU
    h = jnp.dot(x, w1_ref[...], preferred_element_type=jnp.float32) + b1_ref[...]
    a = _ln_relu(h, g_ref[...], beta_ref[...],
                 eps=eps, flag_normalization=flag_normalization, inv_n=inv_n)
    skip = jnp.dot(x, w2_ref[...], preferred_element_type=jnp.float32) + b2_ref[...]
    o_ref[...] = (a + skip).astype(o_ref.dtype)


def _mlp_skip_identity_kernel(x_ref, w1_ref, b1_ref, g_ref, beta_ref, o_ref, *,
                              eps: float, flag_normalization: bool, inv_n: float):
    """dim_input == dim_output: skip branch is Identity (no w2/b2 traffic)."""
    x = x_ref[...]
    h = jnp.dot(x, w1_ref[...], preferred_element_type=jnp.float32) + b1_ref[...]
    a = _ln_relu(h, g_ref[...], beta_ref[...],
                 eps=eps, flag_normalization=flag_normalization, inv_n=inv_n)
    o_ref[...] = (a + x.astype(jnp.float32)).astype(o_ref.dtype)


def mlp_with_skip(x, params, *, flag_normalization=True, eps=1e-5, tm=256):
    """x: [B, dim_input] -> [B, dim_output] (matches the PyTorch module forward)."""
    B, d_in = x.shape
    w1 = params["w1"]                    # [d_in, d_out] (transposed nn.Linear weight)
    d_out = w1.shape[1]
    use_reshape_linear = d_in != d_out

    dtype = x.dtype
    itemsize = jnp.dtype(dtype).itemsize
    lane = 128
    sub = max(8, 32 // itemsize)         # 8 for f32, 16 for bf16, 32 for int8

    # ---- lane/sublane-aligned padded shapes (zero padding is numerically inert:
    #      padded W cols/rows, biases, gamma, beta are zero; padded out cols sliced off)
    d_in_p = _round_up(d_in, lane)
    d_out_p = _round_up(d_out, lane)
    tm_eff = _round_up(max(sub, min(tm, _round_up(B, sub))), sub)
    B_p = _round_up(B, tm_eff)

    def pad2(a, rows, cols):
        return jnp.pad(a, ((0, rows - a.shape[0]), (0, cols - a.shape[1])))

    def pad_row_f32(v, cols):
        return jnp.pad(v.astype(jnp.float32), (0, cols - v.shape[0])).reshape(1, cols)

    x_p = pad2(x, B_p, d_in_p)
    w1_p = pad2(w1.astype(dtype), d_in_p, d_out_p)
    b1_p = pad_row_f32(params["b1"], d_out_p)
    gamma_p = pad_row_f32(params["gamma"], d_out_p)
    beta_p = pad_row_f32(params["beta"], d_out_p)

    grid = (B_p // tm_eff,)
    full2 = lambda shape: pl.BlockSpec(shape, lambda i: (0, 0))
    x_spec = pl.BlockSpec((tm_eff, d_in_p), lambda i: (i, 0))
    o_spec = pl.BlockSpec((tm_eff, d_out_p), lambda i: (i, 0))
    row = lambda: full2((1, d_out_p))

    inv_n = 1.0 / float(d_out)           # divide by the REAL feature count

    common = dict(eps=eps, flag_normalization=flag_normalization, inv_n=inv_n)

    if use_reshape_linear:
        w2_p = pad2(params["w2"].astype(dtype), d_in_p, d_out_p)
        b2_p = pad_row_f32(params["b2"], d_out_p)
        kernel = functools.partial(_mlp_skip_linear_kernel, **common)
        in_specs = [x_spec, full2((d_in_p, d_out_p)), row(), row(), row(),
                    full2((d_in_p, d_out_p)), row()]
        args = (x_p, w1_p, b1_p, gamma_p, beta_p, w2_p, b2_p)
        n_mat = 2
    else:
        kernel = functools.partial(_mlp_skip_identity_kernel, **common)
        in_specs = [x_spec, full2((d_in_p, d_out_p)), row(), row(), row()]
        args = (x_p, w1_p, b1_p, gamma_p, beta_p)
        n_mat = 1

    # ---- scheduler hints --------------------------------------------------
    flops = 2 * B_p * d_in_p * d_out_p * n_mat + 8 * B_p * d_out_p
    transcendentals = B_p if flag_normalization else 0
    bytes_accessed = (x_p.size + n_mat * w1_p.size + B_p * d_out_p) * itemsize \
                     + (2 + n_mat) * d_out_p * 4
    cost = pl.CostEstimate(flops=int(flops),
                           transcendentals=int(transcendentals),
                           bytes_accessed=int(bytes_accessed))

    # Resident weights (double-buffered by default) + x/out tiles + epilogue slack.
    weight_bytes = n_mat * w1_p.size * itemsize
    tile_bytes = (tm_eff * d_in_p + tm_eff * d_out_p) * itemsize
    acc_bytes = tm_eff * d_out_p * 4
    vmem_est = 2 * weight_bytes + 2 * tile_bytes + 2 * acc_bytes
    vmem_limit = min(64 << 20, max(32 << 20, int(vmem_est * 1.25)))

    out_p = pl.pallas_call(
        kernel,
        out_shape=jax.ShapeDtypeStruct((B_p, d_out_p), dtype),
        grid_spec=pltpu.PrefetchScalarGridSpec(
            num_scalar_prefetch=0,
            grid=grid,
            in_specs=in_specs,
            out_specs=o_spec,
        ),
        compiler_params=pltpu.CompilerParams(
            dimension_semantics=("parallel",),
            vmem_limit_bytes=vmem_limit,
        ),
        cost_estimate=cost,
    )(*args)

    return out_p[:B, :d_out]


def init_params(key, dim_input, dim_output, dtype=jnp.float32):
    """nn.Linear-style init (U[-1/sqrt(fan_in), 1/sqrt(fan_in)]), LayerNorm gamma=1, beta=0."""
    k1, k2, k3, k4 = jax.random.split(key, 4)
    bound = 1.0 / jnp.sqrt(dim_input)
    params = {
        "w1": jax.random.uniform(k1, (dim_input, dim_output), dtype, -bound, bound),
        "b1": jax.random.uniform(k2, (dim_output,), dtype, -bound, bound),
        "gamma": jnp.ones((dim_output,), dtype),
        "beta": jnp.zeros((dim_output,), dtype),
    }
    if dim_input != dim_output:
        params["w2"] = jax.random.uniform(k3, (dim_input, dim_output), dtype, -bound, bound)
        params["b2"] = jax.random.uniform(k4, (dim_output,), dtype, -bound, bound)
    return params


def reference(x, params, flag_normalization=True, eps=1e-5):
    h = x @ params["w1"] + params["b1"]
    if flag_normalization:
        mean = jnp.mean(h, axis=-1, keepdims=True)
        var = jnp.mean(jnp.square(h - mean), axis=-1, keepdims=True)
        h = (h - mean) / jnp.sqrt(var + eps)
        h = h * params["gamma"] + params["beta"]
    a = jnp.maximum(h, 0.0)
    skip = (x @ params["w2"] + params["b2"]) if "w2" in params else x
    return a + skip


if __name__ == "__main__":
    key = jax.random.PRNGKey(0)
    kx1, kp1, kx2, kp2 = jax.random.split(key, 4)

    # Case 1: dim_input != dim_output  ->  Linear reshape skip.
    B1, d_in1, d_out1 = 16, 32, 64
    x1 = jax.random.normal(kx1, (B1, d_in1), jnp.float32)
    p1 = init_params(kp1, d_in1, d_out1)
    out1 = jax.block_until_ready(mlp_with_skip(x1, p1, flag_normalization=True))
    ref1 = reference(x1, p1, flag_normalization=True)
    assert out1.shape == (B1, d_out1)
    assert jnp.allclose(out1, ref1, atol=2e-4, rtol=1e-4), "mismatch (linear skip)"

    # Case 2: dim_input == dim_output  ->  Identity skip (ragged batch, padded).
    B2, d2 = 24, 48
    x2 = jax.random.normal(kx2, (B2, d2), jnp.float32)
    p2 = init_params(kp2, d2, d2)
    out2 = jax.block_until_ready(mlp_with_skip(x2, p2, flag_normalization=True))
    ref2 = reference(x2, p2, flag_normalization=True)
    assert out2.shape == (B2, d2)
    assert jnp.allclose(out2, ref2, atol=2e-4, rtol=1e-4), "mismatch (identity skip)"

    print("KERNEL_OK")
</pallas_src>

<mosaic_0001>
module attributes {stable_mosaic.version = 11 : i64} {
  func.func @_mlp_skip_linear_kernel(%arg0: i32, %arg1: memref<16x128xf32, #tpu.memory_space<vmem>>, %arg2: memref<128x128xf32, #tpu.memory_space<vmem>>, %arg3: memref<1x128xf32, #tpu.memory_space<vmem>>, %arg4: memref<1x128xf32, #tpu.memory_space<vmem>>, %arg5: memref<1x128xf32, #tpu.memory_space<vmem>>, %arg6: memref<128x128xf32, #tpu.memory_space<vmem>>, %arg7: memref<1x128xf32, #tpu.memory_space<vmem>>, %arg8: memref<16x128xf32, #tpu.memory_space<vmem>>) attributes {dimension_semantics = [#tpu.dimension_semantics<parallel>], iteration_bounds = array<i64: 1>, scalar_prefetch = 0 : i64, scratch_operands = 0 : i64, tpu.core_type = #tpu.core_type<tc>, window_params = [{transform_indices = @transform_0, window_bounds = array<i64: 16, 128>}, {pipeline_mode = #tpu.pipeline_mode<synchronous>, transform_indices = @transform_1, window_bounds = array<i64: 128, 128>}, {pipeline_mode = #tpu.pipeline_mode<synchronous>, transform_indices = @transform_2, window_bounds = array<i64: 1, 128>}, {pipeline_mode = #tpu.pipeline_mode<synchronous>, transform_indices = @transform_3, window_bounds = array<i64: 1, 128>}, {pipeline_mode = #tpu.pipeline_mode<synchronous>, transform_indices = @transform_4, window_bounds = array<i64: 1, 128>}, {pipeline_mode = #tpu.pipeline_mode<synchronous>, transform_indices = @transform_5, window_bounds = array<i64: 128, 128>}, {pipeline_mode = #tpu.pipeline_mode<synchronous>, transform_indices = @transform_6, window_bounds = array<i64: 1, 128>}, {transform_indices = @transform_7, window_bounds = array<i64: 16, 128>}]} {
    %c0 = arith.constant 0 : index
    %c0_0 = arith.constant 0 : index
    %0 = vector.load %arg1[%c0, %c0_0] : memref<16x128xf32, #tpu.memory_space<vmem>>, vector<16x128xf32>
    %c0_1 = arith.constant 0 : index
    %c0_2 = arith.constant 0 : index
    %1 = vector.load %arg2[%c0_1, %c0_2] : memref<128x128xf32, #tpu.memory_space<vmem>>, vector<128x128xf32>
    %cst = arith.constant dense<0.000000e+00> : vector<16x128xf32>
    %2 = tpu.matmul %0, %1, %cst {dimension_numbers = #tpu.dot_dimension_numbers<[1], [0], [0], [1], [0, 0, 1, 1], [], []>} : vector<16x128xf32>, vector<128x128xf32>, vector<16x128xf32> -> vector<16x128xf32>
    %c0_3 = arith.constant 0 : index
    %c0_4 = arith.constant 0 : index
    %3 = vector.load %arg3[%c0_3, %c0_4] : memref<1x128xf32, #tpu.memory_space<vmem>>, vector<1x128xf32>
    %4 = vector.broadcast %3 : vector<1x128xf32> to vector<16x128xf32>
    %5 = arith.addf %2, %4 : vector<16x128xf32>
    %c0_5 = arith.constant 0 : index
    %c0_6 = arith.constant 0 : index
    %6 = vector.load %arg4[%c0_5, %c0_6] : memref<1x128xf32, #tpu.memory_space<vmem>>, vector<1x128xf32>
    %c0_7 = arith.constant 0 : index
    %c0_8 = arith.constant 0 : index
    %7 = vector.load %arg5[%c0_7, %c0_8] : memref<1x128xf32, #tpu.memory_space<vmem>>, vector<1x128xf32>
    %cst_9 = arith.constant dense<0.000000e+00> : vector<16xf32>
    %8 = vector.multi_reduction <add>, %5, %cst_9 [1] : vector<16x128xf32> to vector<16xf32>
    %9 = vector.shape_cast %8 : vector<16xf32> to vector<16x1xf32>
    %10 = arith.mulf %5, %5 : vector<16x128xf32>
    %cst_10 = arith.constant dense<0.000000e+00> : vector<16xf32>
    %11 = vector.multi_reduction <add>, %10, %cst_10 [1] : vector<16x128xf32> to vector<16xf32>
    %12 = vector.shape_cast %11 : vector<16xf32> to vector<16x1xf32>
    %cst_11 = arith.constant 1.562500e-02 : f32
    %13 = vector.broadcast %cst_11 : f32 to vector<16x1xf32>
    %14 = arith.mulf %9, %13 : vector<16x1xf32>
    %cst_12 = arith.constant 1.562500e-02 : f32
    %15 = vector.broadcast %cst_12 : f32 to vector<16x1xf32>
    %16 = arith.mulf %12, %15 : vector<16x1xf32>
    %17 = arith.mulf %14, %14 : vector<16x1xf32>
    %18 = arith.subf %16, %17 : vector<16x1xf32>
    %cst_13 = arith.constant 0.000000e+00 : f32
    %19 = vector.broadcast %cst_13 : f32 to vector<16x1xf32>
    %20 = arith.maximumf %18, %19 : vector<16x1xf32>
    %21 = vector.broadcast %14 : vector<16x1xf32> to vector<16x128xf32>
    %22 = arith.subf %5, %21 : vector<16x128xf32>
    %cst_14 = arith.constant 9.99999974E-6 : f32
    %23 = vector.broadcast %cst_14 : f32 to vector<16x1xf32>
    %24 = arith.addf %20, %23 : vector<16x1xf32>
    %25 = math.rsqrt %24 : vector<16x1xf32>
    %26 = vector.broadcast %25 : vector<16x1xf32> to vector<16x128xf32>
    %27 = arith.mulf %22, %26 : vector<16x128xf32>
    %28 = vector.broadcast %6 : vector<1x128xf32> to vector<16x128xf32>
    %29 = arith.mulf %27, %28 : vector<16x128xf32>
    %30 = vector.broadcast %7 : vector<1x128xf32> to vector<16x128xf32>
    %31 = arith.addf %29, %30 : vector<16x128xf32>
    %cst_15 = arith.constant 0.000000e+00 : f32
    %32 = vector.broadcast %cst_15 : f32 to vector<16x128xf32>
    %33 = arith.maximumf %31, %32 : vector<16x128xf32>
    %c0_16 = arith.constant 0 : index
    %c0_17 = arith.constant 0 : index
    %34 = vector.load %arg6[%c0_16, %c0_17] : memref<128x128xf32, #tpu.memory_space<vmem>>, vector<128x128xf32>
    %cst_18 = arith.constant dense<0.000000e+00> : vector<16x128xf32>
    %35 = tpu.matmul %0, %34, %cst_18 {dimension_numbers = #tpu.dot_dimension_numbers<[1], [0], [0], [1], [0, 0, 1, 1], [], []>} : vector<16x128xf32>, vector<128x128xf32>, vector<16x128xf32> -> vector<16x128xf32>
    %c0_19 = arith.constant 0 : index
    %c0_20 = arith.constant 0 : index
    %36 = vector.load %arg7[%c0_19, %c0_20] : memref<1x128xf32, #tpu.memory_space<vmem>>, vector<1x128xf32>
    %37 = vector.broadcast %36 : vector<1x128xf32> to vector<16x128xf32>
    %38 = arith.addf %35, %37 : vector<16x128xf32>
    %39 = arith.addf %33, %38 : vector<16x128xf32>
    %c0_21 = arith.constant 0 : index
    %c0_22 = arith.constant 0 : index
    %40 = vector.load %arg8[%c0_21, %c0_22] : memref<16x128xf32, #tpu.memory_space<vmem>>, vector<16x128xf32>
    tpu.vector_store %arg8[%c0_21, %c0_22], %39 {strides = array<i32>} : memref<16x128xf32, #tpu.memory_space<vmem>>, vector<16x128xf32>,
    return
  }
  func.func @transform_0(%arg0: i32) -> (i32, i32) {
    %c0_i32 = arith.constant 0 : i32
    %c0_i32_0 = arith.constant 0 : i32
    return %arg0, %c0_i32 : i32, i32
  }
  func.func @transform_1(%arg0: i32) -> (i32, i32) {
    %c0_i32 = arith.constant 0 : i32
    %c0_i32_0 = arith.constant 0 : i32
    %c0_i32_1 = arith.constant 0 : i32
    return %c0_i32, %c0_i32_0 : i32, i32
  }
  func.func @transform_2(%arg0: i32) -> (i32, i32) {
    %c0_i32 = arith.constant 0 : i32
    %c0_i32_0 = arith.constant 0 : i32
    %c0_i32_1 = arith.constant 0 : i32
    return %c0_i32, %c0_i32_0 : i32, i32
  }
  func.func @transform_3(%arg0: i32) -> (i32, i32) {
    %c0_i32 = arith.constant 0 : i32
    %c0_i32_0 = arith.constant 0 : i32
    %c0_i32_1 = arith.constant 0 : i32
    return %c0_i32, %c0_i32_0 : i32, i32
  }
  func.func @transform_4(%arg0: i32) -> (i32, i32) {
    %c0_i32 = arith.constant 0 : i32
    %c0_i32_0 = arith.constant 0 : i32
    %c0_i32_1 = arith.constant 0 : i32
    return %c0_i32, %c0_i32_0 : i32, i32
  }
  func.func @transform_5(%arg0: i32) -> (i32, i32) {
    %c0_i32 = arith.constant 0 : i32
    %c0_i32_0 = arith.constant 0 : i32
    %c0_i32_1 = arith.constant 0 : i32
    return %c0_i32, %c0_i32_0 : i32, i32
  }
  func.func @transform_6(%arg0: i32) -> (i32, i32) {
    %c0_i32 = arith.constant 0 : i32
    %c0_i32_0 = arith.constant 0 : i32
    %c0_i32_1 = arith.constant 0 : i32
    return %c0_i32, %c0_i32_0 : i32, i32
  }
  func.func @transform_7(%arg0: i32) -> (i32, i32) {
    %c0_i32 = arith.constant 0 : i32
    %c0_i32_0 = arith.constant 0 : i32
    return %arg0, %c0_i32 : i32, i32
  }
}

</mosaic_0001>

<bundles_post_ra>
// kernel: tpu_custom_call.1
= control target key start
LH: loop header
LB: loop body
LE: loop exit
PB: predicated region body
PF: predicated region fallthrough
CT: control target
= control target key end

     0   :  { %12 = vsyncpa [#allocation3], 0  ;;  %s739_s0 = inlined_call_operand.hbm [shape: f32[16,128], index: 0, kind: input, shape index: {}]   ;;  %s740_s1 = inlined_call_operand.hbm [shape: f32[128,128], index: 1, kind: input, shape index: {}]   ;;  %s741_s2 = inlined_call_operand.vmem [shape: f32[1,128], index: 2, kind: input, shape index: {}]   ;;  %s742_s3 = inlined_call_operand.vmem [shape: f32[1,128], index: 3, kind: input, shape index: {}]   ;;  %s743_s4 = inlined_call_operand.vmem [shape: f32[1,128], index: 4, kind: input, shape index: {}]   ;;  %s744_s5 = inlined_call_operand.hbm [shape: f32[128,128], index: 5, kind: input, shape index: {}]   ;;  %s745_s6 = inlined_call_operand.vmem [shape: f32[1,128], index: 6, kind: input, shape index: {}]   ;;  %s746_s7 = inlined_call_operand.hbm [shape: f32[16,128], index: 7, kind: output, shape index: {}]  }
   0x1   :  { %13 = vsyncpa [#allocation6], 0 }
   0x2   :  { %14 = vsyncpa [#allocation4], 0  ;;  %s614_s24 = smov [#allocation5]   ;;  %s615_s26 = smov [#allocation2]  }
   0x3   :  { %s32_s25 = sshll.u32 %s614_s24, 4  ;;  %s20_s27 = sshll.u32 %s615_s26, 4  ;;  %s33_s25 = int_to_ptr.vmem [resolvable:$true] %s32_s25  ;;  %s660_s27 = int_to_ptr.vmem [resolvable:$true] %s20_s27 }
   0x4   :  { %s520_s30 = scalar_lea.hbm %s740_s1, 2048 }
   0x5   :  { %p521_p0 = scmp.ne.s32.totalorder %s740_s1, %s520_s30  ;;  %p524_p1 = scmp.lt.u32.totalorder %s520_s30, %s740_s1 }
   0x7   :  { %p526_p2 = pnand %p524_p1, %p521_p0 }
   0x9   :  { %529 = shalt.err (!%p526_p2)
}
   0xa   :  { %s530_s12 = scalar_lea.vmem %s33_s25, 2048  ;;  %p535_p4 = scmp.lt.s32.totalorder %s33_s25, %s33_s25 }
   0xb   :  { %p531_p3 = scmp.ne.s32.totalorder %s33_s25, %s530_s12  ;;  %p536_p5 = scmp.lt.s32.totalorder %s530_s12, %s530_s12 }
   0xd   :  { %p537_p6 = por %p536_p5, %p535_p4 }
   0xf   :  { %p538_p7 = pnand %p537_p6, %p531_p3 }
  0x11   :  { %541 = shalt.err (!%p538_p7)
}
  0x12   :  { %s616_s13 = smov 128   ;;  %s617_s14 = smov 8  }
  0x13   :  { %38 = dma.hbm_to_vmem [thread:$0]  %s740_s1, 2048, %s33_s25, [#allocation6], %s616_s13, %s616_s13, %s617_s14  }
  0x14   :  { %s542_s19 = scalar_lea.hbm %s739_s0, 256 }
  0x15   :  { %p543_p8 = scmp.ne.s32.totalorder %s739_s0, %s542_s19  ;;  %p546_p9 = scmp.lt.u32.totalorder %s542_s19, %s739_s0 }
  0x17   :  { %p548_p10 = pnand %p546_p9, %p543_p8 }
  0x19   :  { %551 = shalt.err (!%p548_p10)
}
  0x1a   :  { %s552_s24 = scalar_lea.vmem %s660_s27, 256  ;;  %p557_p12 = scmp.lt.s32.totalorder %s660_s27, %s660_s27 }
  0x1b   :  { %p553_p11 = scmp.ne.s32.totalorder %s660_s27, %s552_s24  ;;  %p558_p13 = scmp.lt.s32.totalorder %s552_s24, %s552_s24 }
  0x1d   :  { %p559_p0 = por %p558_p13, %p557_p12 }
  0x1f   :  { %p560_p1 = pnand %p559_p0, %p553_p11 }
  0x21   :  { %563 = shalt.err (!%p560_p1)
}
  0x22   :  { %26 = dma.hbm_to_vmem [thread:$0]  %s739_s0, 256, %s660_s27, [#allocation3], %s616_s13, %s616_s13, %s617_s14  }
  0x23   :  { %s618_s26 = smov [#allocation7]   ;;  %s564_s8 = scalar_lea.hbm %s744_s5, 2048 }
  0x24   :  { %s50_s28 = sshll.u32 %s618_s26, 4  ;;  %p565_p2 = scmp.ne.s32.totalorder %s744_s5, %s564_s8  ;;  %s51_s28 = int_to_ptr.vmem [resolvable:$true] %s50_s28 }
  0x25   :  { %p568_p3 = scmp.lt.u32.totalorder %s564_s8, %s744_s5 }
  0x27   :  { %p570_p4 = pnand %p568_p3, %p565_p2 }
  0x29   :  { %573 = shalt.err (!%p570_p4)
}
  0x2a   :  { %s574_s15 = scalar_lea.vmem %s51_s28, 2048  ;;  %p579_p6 = scmp.lt.s32.totalorder %s51_s28, %s51_s28 }
  0x2b   :  { %p575_p5 = scmp.ne.s32.totalorder %s51_s28, %s574_s15  ;;  %p580_p7 = scmp.lt.s32.totalorder %s574_s15, %s574_s15 }
  0x2d   :  { %p581_p8 = por %p580_p7, %p579_p6 }
  0x2f   :  { %p582_p9 = pnand %p581_p8, %p575_p5 }
  0x31   :  { %585 = shalt.err (!%p582_p9)
}
  0x32   :  { %56 = dma.hbm_to_vmem [thread:$0]  %s744_s5, 2048, %s51_s28, [#allocation6], %s616_s13, %s616_s13, %s617_s14  }
  0x33   :  { %608 = dma.done.wait [#allocation3], 256  }
  0x34   :  { %609 = vsyncadd [#allocation3], 4294967040 }
  0x35   :  { %610 = dma.done.wait [#allocation6], 4096  }
  0x36   :  { %611 = vsyncadd [#allocation6], 4294963200  ;;  %v70_v0 = vld [vmem:[#allocation5] sm:$0xff]  ;;  %v71_v1 = vld [vmem:[#allocation5 + $0x8] sm:$0xff] }
  0x37   :  { %v72_v2 = vld [vmem:[#allocation5 + $0x10] sm:$0xff]  ;;  %v446_v3 = vpack.c.bf16 %v71_v1, %v70_v0  ;;  %v73_v4 = vld [vmem:[#allocation5 + $0x18] sm:$0xff]  ;;  %v74_v6 = vld [vmem:[#allocation5 + $0x20] sm:$0xff] }
  0x38   :  { %v450_v5 = vpack.c.bf16 %v73_v4, %v72_v2  ;;  %v75_v7 = vld [vmem:[#allocation5 + $0x28] sm:$0xff]  ;;  %v76_v9 = vld [vmem:[#allocation5 + $0x30] sm:$0xff]  ;;  %v77_v10 = vld [vmem:[#allocation5 + $0x38] sm:$0xff] }
  0x39   :  { %447 = vmatprep.subr.bf16.mxu0 %v446_v3  ;;  %v454_v8 = vpack.c.bf16 %v75_v7, %v74_v6  ;;  %v68_v11 = vld [vmem:[#allocation2] sm:$0xff]  ;;  %v216_v12 = vld [vmem:[#allocation7] sm:$0xff]  ;;  %v217_v13 = vld [vmem:[#allocation7 + $0x8] sm:$0xff]  ;;  %v458_v20 = vpack.c.bf16 %v77_v10, %v76_v9 }
  0x3a   :  { %449 = vmatpush3.bf16.msra.mxu0 %v446_v3  ;;  %408 = vmatprep.mubr.f32.mxu0 %v68_v11  ;;  %v218_v14 = vld [vmem:[#allocation7 + $0x10] sm:$0xff]  ;;  %v478_v15 = vpack.c.bf16 %v217_v13, %v216_v12  ;;  %v219_v16 = vld [vmem:[#allocation7 + $0x18] sm:$0xff]  ;;  %v220_v18 = vld [vmem:[#allocation7 + $0x20] sm:$0xff] }
  0x3b   :  { %451 = vmatprep.subr.bf16.mxu0 %v450_v5  ;;  %443 = vmatprep.mubr.f32.mxu1 %v68_v11  ;;  %v482_v17 = vpack.c.bf16 %v219_v16, %v218_v14  ;;  %v221_v19 = vld [vmem:[#allocation7 + $0x28] sm:$0xff]  ;;  %v78_v21 = vld [vmem:[#allocation5 + $0x40] sm:$0xff]  ;;  %v222_v24 = vld [vmem:[#allocation7 + $0x30] sm:$0xff] }
  0x3c   :  { %479 = vmatprep.subr.bf16.mxu1 %v478_v15  ;;  %v79_v22 = vld [vmem:[#allocation5 + $0x48] sm:$0xff]  ;;  %v486_v23 = vpack.c.bf16 %v221_v19, %v220_v18  ;;  %v223_v25 = vld [vmem:[#allocation7 + $0x38] sm:$0xff]  ;;  %v80_v27 = vld [vmem:[#allocation5 + $0x50] sm:$0xff] }
  0x3d   :  { %481 = vmatpush3.bf16.msra.mxu1 %v478_v15  ;;  %v462_v26 = vpack.c.bf16 %v79_v22, %v78_v21  ;;  %v81_v28 = vld [vmem:[#allocation5 + $0x58] sm:$0xff]  ;;  %v490_v29 = vpack.c.bf16 %v223_v25, %v222_v24  ;;  %v224_v30 = vld [vmem:[#allocation7 + $0x40] sm:$0xff]  ;;  %v225_v31 = vld [vmem:[#allocation7 + $0x48] sm:$0xff] }
  0x3e   :  { %453 = vmatpush3.bf16.msra.mxu0 %v450_v5  ;;  %483 = vmatprep.subr.bf16.mxu1 %v482_v17  ;;  %v466_v32 = vpack.c.bf16 %v81_v28, %v80_v27  ;;  %v82_v33 = vld [vmem:[#allocation5 + $0x60] sm:$0xff]  ;;  %v83_v34 = vld [vmem:[#allocation5 + $0x68] sm:$0xff]  ;;  %v494_v35 = vpack.c.bf16 %v225_v31, %v224_v30  ;;  %v226_v36 = vld [vmem:[#allocation7 + $0x50] sm:$0xff] }
  0x3f   :  { %455 = vmatprep.subr.bf16.mxu0 %v454_v8  ;;  %v227_v37 = vld [vmem:[#allocation7 + $0x58] sm:$0xff]  ;;  %v470_v38 = vpack.c.bf16 %v83_v34, %v82_v33  ;;  %v84_v39 = vld [vmem:[#allocation5 + $0x70] sm:$0xff]  ;;  %v228_v42 = vld [vmem:[#allocation7 + $0x60] sm:$0xff] }
  0x40   :  { %v85_v40 = vld [vmem:[#allocation5 + $0x78] sm:$0xff]  ;;  %v498_v41 = vpack.c.bf16 %v227_v37, %v226_v36  ;;  %v229_v43 = vld [vmem:[#allocation7 + $0x68] sm:$0xff]  ;;  %v230_v46 = vld [vmem:[#allocation7 + $0x70] sm:$0xff] }
  0x41   :  { %485 = vmatpush3.bf16.msra.mxu1 %v482_v17  ;;  %v474_v44 = vpack.c.bf16 %v85_v40, %v84_v39  ;;  %v502_v45 = vpack.c.bf16 %v229_v43, %v228_v42  ;;  %v231_v47 = vld [vmem:[#allocation7 + $0x78] sm:$0xff]  ;;  %v336_v50 = vld [vmem:[%s741_s2] ss:$0 sm:$0xff] }
  0x42   :  { %457 = vmatpush3.bf16.msra.mxu0 %v454_v8  ;;  %487 = vmatprep.subr.bf16.mxu1 %v486_v23  ;;  %v506_v48 = vpack.c.bf16 %v231_v47, %v230_v46  ;;  %v69_v49 = vld [vmem:[#allocation2 + $0x8] sm:$0xff]  ;;  %v337_v13 = vld [vmem:[%s742_s3] ss:$0 sm:$0xff]  ;;  %s619_s3 = smov [#allocation8]  }
  0x43   :  { %459 = vmatprep.subr.bf16.mxu0 %v458_v20  ;;  %v338_v15 = vld [vmem:[%s743_s4] ss:$0 sm:$0xff]  ;;  %s323_s22 = sshll.u32 %s619_s3, 4  ;;  %s324_s22 = int_to_ptr.vmem [resolvable:$true] %s323_s22 }
  0x44   :  { %v339_v16 = vld [vmem:[%s745_s6] ss:$0 sm:$0xff]  ;;  %s586_s4 = scalar_lea.vmem %s324_s22, 256  ;;  %p591_p11 = scmp.lt.s32.totalorder %s324_s22, %s324_s22 }
  0x45   :  { %489 = vmatpush3.bf16.msra.mxu1 %v486_v23  ;;  %p587_p10 = scmp.ne.s32.totalorder %s324_s22, %s586_s4  ;;  %p592_p12 = scmp.lt.s32.totalorder %s586_s4, %s586_s4 }
  0x46   :  { %461 = vmatpush3.bf16.msra.mxu0 %v458_v20  ;;  %491 = vmatprep.subr.bf16.mxu1 %v490_v29 }
  0x47   :  { %463 = vmatprep.subr.bf16.mxu0 %v462_v26  ;;  %p593_p13 = por %p592_p12, %p591_p11 }
  0x49   :  { %493 = vmatpush3.bf16.msra.mxu1 %v490_v29  ;;  %p594_p0 = pnand %p593_p13, %p587_p10 }
  0x4a   :  { %465 = vmatpush3.bf16.msra.mxu0 %v462_v26  ;;  %495 = vmatprep.subr.bf16.mxu1 %v494_v35 }
  0x4b   :  { %467 = vmatprep.subr.bf16.mxu0 %v466_v32 }
  0x4d   :  { %497 = vmatpush3.bf16.msra.mxu1 %v494_v35 }
  0x4e   :  { %469 = vmatpush3.bf16.msra.mxu0 %v466_v32  ;;  %499 = vmatprep.subr.bf16.mxu1 %v498_v41 }
  0x4f   :  { %471 = vmatprep.subr.bf16.mxu0 %v470_v38 }
  0x51   :  { %501 = vmatpush3.bf16.msra.mxu1 %v498_v41 }
  0x52   :  { %473 = vmatpush3.bf16.msra.mxu0 %v470_v38  ;;  %503 = vmatprep.subr.bf16.mxu1 %v502_v45 }
  0x53   :  { %475 = vmatprep.subr.bf16.mxu0 %v474_v44 }
  0x55   :  { %505 = vmatpush3.bf16.msra.mxu1 %v502_v45 }
  0x56   :  { %477 = vmatpush3.bf16.msra.mxu0 %v474_v44  ;;  %507 = vmatprep.subr.bf16.mxu1 %v506_v48 }
  0x59   :  { %409 = vmatmul.mubr.f32.vlgmr.msra.gmra.mrb[0].mxu0 %v69_v49  ;;  %509 = vmatpush3.bf16.msra.mxu1 %v506_v48 }
  0x5c   :  { %444 = vmatmul.mubr.f32.vlgmr.msra.gmra.mrb[0].mxu1 %v69_v49 }
 0x12c   :  { %v410_v51 = vpop.f32.mrb[0].mxu0 }
 0x12d   :  { %v159_v52 = vpop.f32.mrb[1].mxu0  ;;  %v165_v54 = vadd.f32 %v410_v51, %v336_v50 }
 0x12e   :  { %v160_v53 = vadd.f32 %v336_v50, %v159_v52 }
 0x12f   :  { %v175_v56 = vmul.f32 %v165_v54, %v165_v54  ;;  %v445_v57 = vpop.f32.mrb[0].mxu1 }
 0x130   :  { %170 = vadd.xlane.f32.xlu0 %v160_v53  ;;  %v174_v55 = vmul.f32 %v160_v53, %v160_v53  ;;  %v305_v58 = vpop.f32.mrb[1].mxu1  ;;  %v311_v26 = vadd.f32 %v445_v57, %v339_v16 }
 0x131   :  { %v306_v22 = vadd.f32 %v339_v16, %v305_v58 }
 0x132   :  { %176 = vadd.xlane.f32.xlu1 %v174_v55 }
 0x134   :  { %172 = vadd.xlane.f32.xlu0 %v165_v54 }
 0x136   :  { %178 = vadd.xlane.f32.xlu1 %v175_v56 }
 0x1bd   :  { %v171_v59 = vpop.xlane.xlu0 %170 }
 0x1be   :  { %v180_v60 = vmul.f32 0.015625, %v171_v59 }
 0x1bf   :  { %v177_v61 = vpop.xlane.xlu1 %176 }
 0x1c0   :  { %v184_v62 = vmul.f32 %v180_v60, %v180_v60  ;;  %v182_v63 = vmul.f32 0.015625, %v177_v61  ;;  %v190_v11 = vsub.f32 %v160_v53, %v180_v60 }
 0x1c1   :  { %v173_v0 = vpop.xlane.xlu0 %172 }
 0x1c2   :  { %v186_v1 = vsub.f32 %v182_v63, %v184_v62  ;;  %v181_v2 = vmul.f32 0.015625, %v173_v0 }
 0x1c3   :  { %v179_v3 = vpop.xlane.xlu1 %178 }
 0x1c4   :  { %v188_v4 = vmax.f32 %v186_v1, 0.0  ;;  %v185_v5 = vmul.f32 %v181_v2, %v181_v2  ;;  %v183_v6 = vmul.f32 0.015625, %v179_v3  ;;  %v191_v17 = vsub.f32 %v165_v54, %v181_v2 }
 0x1c6   :  { %v192_v7 = vadd.f32 1e-05, %v188_v4  ;;  %v187_v8 = vsub.f32 %v183_v6, %v185_v5 }
 0x1c8   :  { %516 = vrsqrt.f32 %v192_v7  ;;  %v189_v9 = vmax.f32 %v187_v8, 0.0 }
 0x1ca   :  { %v193_v10 = vadd.f32 1e-05, %v189_v9 }
 0x1cc   :  { %518 = vrsqrt.f32 %v193_v10 }
 0x1d2   :  { %v517_v12 = vpop.eup %516 }
 0x1d3   :  { %v196_v14 = vmul.f32 %v517_v12, %v190_v11 }
 0x1d5   :  { %v204_v18 = vmul.f32 %v337_v13, %v196_v14 }
 0x1d6   :  { %v519_v19 = vpop.eup %518 }
 0x1d7   :  { %v197_v20 = vmul.f32 %v519_v19, %v191_v17  ;;  %v212_v21 = vadd.f32 %v338_v15, %v204_v18 }
 0x1d9   :  { %v205_v23 = vmul.f32 %v337_v13, %v197_v20  ;;  %v214_v24 = vmax.f32 %v212_v21, 0.0 }
 0x1db   :  { %v213_v25 = vadd.f32 %v338_v15, %v205_v23  ;;  %v314_v27 = vadd.f32 %v306_v22, %v214_v24 }
 0x1dd   :  { %v215_v28 = vmax.f32 %v213_v25, 0.0  ;;  %316 = vst [vmem:[#allocation8] sm:$0xff] %v314_v27 }
 0x1df   :  { %v315_v29 = vadd.f32 %v311_v26, %v215_v28 }
 0x1e1   :  { %317 = vst [vmem:[#allocation8 + $0x8] sm:$0xff] %v315_v29 }
 0x1e2   :  { %597 = shalt.err (!%p594_p0)
}
 0x1e3   :  { %s598_s24 = scalar_lea.hbm %s746_s7, 256 }
 0x1e4   :  { %p599_p1 = scmp.ne.s32.totalorder %s746_s7, %s598_s24  ;;  %p602_p2 = scmp.lt.u32.totalorder %s598_s24, %s746_s7 }
 0x1e6   :  { %p604_p3 = pnand %p602_p2, %p599_p1 }
 0x1e8   :  { %607 = shalt.err (!%p604_p3)
}
 0x1e9   :  { %329 = dma.vmem_to_hbm [thread:$0]  %s324_s22, 256, %s746_s7, [#allocation4], %s616_s13, %s616_s13, %s617_s14  }
 0x1ea   :  { %612 = dma.done.wait [#allocation4], 256  }
 0x1eb   :  { %613 = vsyncadd [#allocation4], 4294967040 }
 0x1ec   :  { %333 = vsyncpa [#allocation3], 1 }
 0x1ed   :  { %334 = vsyncpa [#allocation6], 1 }
 0x1ee   :  { %335 = vsyncpa [#allocation4], 1 }

</bundles_post_ra>
